<compile_context>
chip_gen: v7x
topology: tpu7x:2x2x1
jax: 0.10.0
libtpu: 0.0.40
codegen_flags: <defaults>
</compile_context>

<pallas_src>
import functools

import jax
import jax.numpy as jnp
from jax.experimental import pallas as pl
from jax.experimental.pallas import tpu as pltpu

_LANES = 128
_FUSE_MAX_NODES = 1024   # below this the whole model runs as a single no-grid pallas_call


# ---------------------------------------------------------------------------
# Shared in-kernel tail: LSTM1 -> LSTM2 -> relu -> Linear -> tanh
# ---------------------------------------------------------------------------

def _lstm_lin_tail(g1b, g2b, xb, w_lstm_ref, wlh_ref, wlx_ref, b_ref, H):
    """g1b/g2b/xb are bf16 row blocks; weights bf16, biases packed f32 (9,128)."""
    f32 = jnp.float32
    bf = jnp.bfloat16

    # ---- LSTM 1, seq_len=1, h0=c0=0 -> forget gate & W_hh dead. Gates [i|g|o]
    # are lane-packed in w_lstm rows 0:H (multiplies g1) and H:2H (multiplies g2).
    gates1 = (jnp.dot(g1b, w_lstm_ref[0:H, :], preferred_element_type=f32)
              + jnp.dot(g2b, w_lstm_ref[H:2 * H, :], preferred_element_type=f32)
              + b_ref[6:7, 0:3 * H])
    i1 = jax.nn.sigmoid(gates1[:, 0:H])
    c1 = jnp.tanh(gates1[:, H:2 * H])
    o1 = jax.nn.sigmoid(gates1[:, 2 * H:3 * H])
    h1 = o1 * jnp.tanh(i1 * c1)

    # ---- LSTM 2 (zero initial state), gates packed in w_lstm rows 2H:3H ----
    gates2 = (jnp.dot(h1.astype(bf), w_lstm_ref[2 * H:3 * H, :],
                      preferred_element_type=f32)
              + b_ref[7:8, 0:3 * H])
    i2 = jax.nn.sigmoid(gates2[:, 0:H])
    c2 = jnp.tanh(gates2[:, H:2 * H])
    o2 = jax.nn.sigmoid(gates2[:, 2 * H:3 * H])
    h2 = o2 * jnp.tanh(i2 * c2)

    # ---- relu -> (dropout = identity) -> Linear -> tanh; lane-padded output ----
    out = (jnp.dot(jnp.maximum(h1, 0.0).astype(bf), wlh_ref[0:H, :],
                   preferred_element_type=f32)
           + jnp.dot(jnp.maximum(h2, 0.0).astype(bf), wlh_ref[H:2 * H, :],
                     preferred_element_type=f32)
           + jnp.dot(jnp.maximum(xb, 0).astype(bf), wlx_ref[...],
                     preferred_element_type=f32)
           + b_ref[8:9, :])
    return jnp.tanh(out)


# ---------------------------------------------------------------------------
# Fused single-call kernel (small graphs: everything VMEM resident)
# ---------------------------------------------------------------------------

def _fused_kernel(a_ref, x_ref, w1_ref, w2_ref, w_lstm_ref, wlh_ref, wlx_ref,
                  b_ref, o_ref, *, H):
    f32 = jnp.float32
    bf = jnp.bfloat16

    a = a_ref[...]                       # (N, N) bf16 normalized adjacency
    xb = x_ref[...].astype(bf)           # (N, F)

    # GCN layer 1: BN1(relu(A @ (X @ W1) + b1)), BN folded into scale/shift
    xw1 = jnp.dot(xb, w1_ref[...], preferred_element_type=f32).astype(bf)
    g1 = jnp.dot(a, xw1, preferred_element_type=f32) + b_ref[0:1, 0:H]
    g1b = (jnp.maximum(g1, 0.0) * b_ref[1:2, 0:H] + b_ref[2:3, 0:H]).astype(bf)

    # GCN layer 2
    xw2 = jnp.dot(g1b, w2_ref[...], preferred_element_type=f32).astype(bf)
    g2 = jnp.dot(a, xw2, preferred_element_type=f32) + b_ref[3:4, 0:H]
    g2b = (jnp.maximum(g2, 0.0) * b_ref[4:5, 0:H] + b_ref[5:6, 0:H]).astype(bf)

    o_ref[...] = _lstm_lin_tail(g1b, g2b, xb, w_lstm_ref, wlh_ref, wlx_ref, b_ref, H)


# ---------------------------------------------------------------------------
# Row-tiled kernels (large graphs)
# ---------------------------------------------------------------------------

def _proj1_kernel(x_ref, w1_ref, o_ref):
    """xw1 tile = (x_tile @ W1) in bf16."""
    o_ref[...] = jnp.dot(x_ref[...].astype(jnp.bfloat16), w1_ref[...],
                         preferred_element_type=jnp.float32).astype(o_ref.dtype)


def _agg1_kernel(a_ref, xw1_ref, w2_ref, b_ref, g1_ref, xw2_ref, *, H):
    """g1 tile = BN1(relu(A_row @ XW1 + b1)); xw2 tile = g1 @ W2 (fused epilogue)."""
    f32 = jnp.float32
    bf = jnp.bfloat16
    g = jnp.dot(a_ref[...], xw1_ref[...], preferred_element_type=f32) + b_ref[0:1, 0:H]
    gb = (jnp.maximum(g, 0.0) * b_ref[1:2, 0:H] + b_ref[2:3, 0:H]).astype(bf)
    g1_ref[...] = gb
    xw2_ref[...] = jnp.dot(gb, w2_ref[...], preferred_element_type=f32).astype(bf)


def _agg2_lstm_lin_kernel(a_ref, xw2_ref, x_ref, g1_ref, w_lstm_ref, wlh_ref,
                          wlx_ref, b_ref, o_ref, *, H):
    f32 = jnp.float32
    bf = jnp.bfloat16
    g2 = jnp.dot(a_ref[...], xw2_ref[...], preferred_element_type=f32) + b_ref[3:4, 0:H]
    g2b = (jnp.maximum(g2, 0.0) * b_ref[4:5, 0:H] + b_ref[5:6, 0:H]).astype(bf)
    g1b = g1_ref[...]
    xb = x_ref[...].astype(bf)
    o_ref[...] = _lstm_lin_tail(g1b, g2b, xb, w_lstm_ref, wlh_ref, wlx_ref, b_ref, H)


# ---------------------------------------------------------------------------
# Parameter packing (bf16 weights, lane-packed gates, single bias block)
# ---------------------------------------------------------------------------

def _pack_params(params, dim_h):
    H = dim_h
    f32 = jnp.float32
    bf = jnp.bfloat16
    eps = 1e-5

    # fold eval-mode BatchNorm into scale/shift
    s1 = params["bn1_gamma"] / jnp.sqrt(params["bn1_var"] + eps)
    t1 = params["bn1_beta"] - params["bn1_mean"] * s1
    s2 = params["bn2_gamma"] / jnp.sqrt(params["bn2_var"] + eps)
    t2 = params["bn2_beta"] - params["bn2_mean"] * s2

    # PyTorch gate order i,f,g,o; forget gate dead (c0 = 0) -> keep [i|g|o]
    def gate_cols(w_t):                  # (K, 4H) -> (K, 3H)
        return jnp.concatenate([w_t[:, 0:H], w_t[:, 2 * H:3 * H],
                                w_t[:, 3 * H:4 * H]], axis=1)

    def gate_bias(bih, bhh):
        b = bih + bhh
        return jnp.concatenate([b[0:H], b[2 * H:3 * H], b[3 * H:4 * H]])

    wl1 = gate_cols(params["lstm1_wih"].T)      # (2H, 3H): rows 0:H mult g1, H:2H mult g2
    wl2 = gate_cols(params["lstm2_wih"].T)      # (H, 3H)
    w_lstm = jnp.concatenate([wl1, wl2], axis=0).astype(bf)   # (3H, 3H)

    # final Linear: rows (h1 | h2 | x), single output column lane-padded to 128
    lin_t = params["lin_w"].T                   # (2H + F, 1)

    def pad_lanes(w):
        return jnp.pad(w, ((0, 0), (0, _LANES - w.shape[1])))

    w_lin_h = pad_lanes(lin_t[0:2 * H]).astype(bf)   # (2H, 128)
    w_lin_x = pad_lanes(lin_t[2 * H:]).astype(bf)    # (F, 128)

    def lane_row(v):
        v = jnp.asarray(v, f32).reshape(1, -1)
        return jnp.pad(v, ((0, 0), (0, _LANES - v.shape[1])))

    biases = jnp.concatenate([
        lane_row(params["gcn1_b"]), lane_row(s1), lane_row(t1),     # rows 0..2
        lane_row(params["gcn2_b"]), lane_row(s2), lane_row(t2),     # rows 3..5
        lane_row(gate_bias(params["lstm1_bih"], params["lstm1_bhh"])),  # row 6
        lane_row(gate_bias(params["lstm2_bih"], params["lstm2_bhh"])),  # row 7
        lane_row(params["lin_b"]),                                  # row 8
    ], axis=0)                                   # (9, 128) f32

    return {
        "w1": params["gcn1_w"].T.astype(bf),     # (F, H)
        "w2": params["gcn2_w"].T.astype(bf),     # (H, H)
        "w_lstm": w_lstm,                        # (3H, 3H)
        "w_lin_h": w_lin_h,                      # (2H, 128)
        "w_lin_x": w_lin_x,                      # (F, 128)
        "biases": biases,                        # (9, 128)
    }


# ---------------------------------------------------------------------------
# Wrapper
# ---------------------------------------------------------------------------

def gcn_norm_dense(edge_index, edge_weight, num_nodes):
    """Dense sym-normalized adjacency matching PyG GCNConv (add_self_loops=True)."""
    row = edge_index[0]
    col = edge_index[1]
    loop = jnp.arange(num_nodes, dtype=row.dtype)
    row = jnp.concatenate([row, loop])
    col = jnp.concatenate([col, loop])
    w = jnp.concatenate([edge_weight, jnp.ones((num_nodes,), edge_weight.dtype)])
    deg = jnp.zeros((num_nodes,), jnp.float32).at[col].add(w)
    dinv = jnp.where(deg > 0, 1.0 / jnp.sqrt(deg), 0.0)
    norm = dinv[row] * w * dinv[col]
    # aggregation: out[target] += norm * x[source]  ->  A_hat[col, row] = norm
    return jnp.zeros((num_nodes, num_nodes), jnp.float32).at[col, row].add(norm)


def _pick_tile(n):
    for t in (512, 256, 128, 64, 32, 16):
        if n % t == 0:
            return t
    return n


def _forward_fused(x, a_bf, packed, *, H):
    N = x.shape[0]
    vmem = pl.BlockSpec(memory_space=pltpu.MemorySpace.VMEM)
    out = pl.pallas_call(
        functools.partial(_fused_kernel, H=H),
        out_shape=jax.ShapeDtypeStruct((N, _LANES), jnp.float32),
        in_specs=[vmem] * 8,
        out_specs=vmem,
    )(a_bf, x, packed["w1"], packed["w2"], packed["w_lstm"],
      packed["w_lin_h"], packed["w_lin_x"], packed["biases"])
    return out[:, :1]


def _forward_tiled(x, a_bf, packed, *, H, tile_m):
    N, F = x.shape
    if tile_m is None:
        tile_m = _pick_tile(N)
    # bf16 sublane packing -> row tiles 16-aligned (or the full extent)
    assert N % tile_m == 0 and (tile_m % 16 == 0 or tile_m == N)
    grid = (N // tile_m,)
    parallel = pltpu.CompilerParams(
        dimension_semantics=("parallel",),
        vmem_limit_bytes=48 * 1024 * 1024)

    def row(shape):
        return pl.BlockSpec(shape, lambda i: (i, 0))

    def const(shape):
        return pl.BlockSpec(shape, lambda i: (0, 0))

    # 1) xw1 = X @ W1 (row-tiled so it pipelines and megacore-shards)
    xw1 = pl.pallas_call(
        _proj1_kernel,
        out_shape=jax.ShapeDtypeStruct((N, H), jnp.bfloat16),
        grid=grid,
        in_specs=[row((tile_m, F)), const((F, H))],
        out_specs=row((tile_m, H)),
        compiler_params=parallel,
    )(x, packed["w1"])

    # 2) g1 = BN1(relu(A @ xw1 + b1)); xw2 = g1 @ W2 fused in the same call
    g1, xw2 = pl.pallas_call(
        functools.partial(_agg1_kernel, H=H),
        out_shape=(jax.ShapeDtypeStruct((N, H), jnp.bfloat16),
                   jax.ShapeDtypeStruct((N, H), jnp.bfloat16)),
        grid=grid,
        in_specs=[row((tile_m, N)), const((N, H)), const((H, H)),
                  const((9, _LANES))],
        out_specs=(row((tile_m, H)), row((tile_m, H))),
        compiler_params=parallel,
    )(a_bf, xw1, packed["w2"], packed["biases"])

    # 3) layer-2 aggregation + LSTM1 + LSTM2 + relu + Linear + tanh
    out = pl.pallas_call(
        functools.partial(_agg2_lstm_lin_kernel, H=H),
        out_shape=jax.ShapeDtypeStruct((N, _LANES), jnp.float32),
        grid=grid,
        in_specs=[row((tile_m, N)), const((N, H)), row((tile_m, F)),
                  row((tile_m, H)),
                  const((3 * H, 3 * H)), const((2 * H, _LANES)),
                  const((F, _LANES)), const((9, _LANES))],
        out_specs=row((tile_m, _LANES)),
        compiler_params=parallel,
    )(a_bf, xw2, x, g1, packed["w_lstm"], packed["w_lin_h"], packed["w_lin_x"],
      packed["biases"])

    return out[:, :1]


def temporal_gnn_forward(x, edge_index, edge_weight, params, *, dim_h,
                         fused=None, tile_m=None):
    N, _ = x.shape
    H = dim_h
    assert 3 * H <= _LANES, "gate lane-packing assumes 3 * dim_h <= 128"

    a_bf = gcn_norm_dense(edge_index, edge_weight, N).astype(jnp.bfloat16)
    packed = _pack_params(params, H)

    if fused is None:
        fused = N <= _FUSE_MAX_NODES
    if fused:
        return _forward_fused(x, a_bf, packed, H=H)
    return _forward_tiled(x, a_bf, packed, H=H, tile_m=tile_m)


# ---------------------------------------------------------------------------
# Pure-JAX reference (f32) for correctness checking
# ---------------------------------------------------------------------------

def temporal_gnn_reference(x, edge_index, edge_weight, params, *, dim_h):
    H = dim_h
    N = x.shape[0]
    a = gcn_norm_dense(edge_index, edge_weight, N)
    eps = 1e-5

    def bn(v, g, b, m, var):
        return (v - m) / jnp.sqrt(var + eps) * g + b

    g1 = jnp.maximum(a @ (x @ params["gcn1_w"].T) + params["gcn1_b"], 0.0)
    g1 = bn(g1, params["bn1_gamma"], params["bn1_beta"],
            params["bn1_mean"], params["bn1_var"])
    g2 = jnp.maximum(a @ (g1 @ params["gcn2_w"].T) + params["gcn2_b"], 0.0)
    g2 = bn(g2, params["bn2_gamma"], params["bn2_beta"],
            params["bn2_mean"], params["bn2_var"])
    xcat = jnp.concatenate([g1, g2], axis=1)

    def lstm_step(xin, wih, bih, bhh):
        gates = xin @ wih.T + bih + bhh
        i = jax.nn.sigmoid(gates[:, 0:H])
        g = jnp.tanh(gates[:, 2 * H:3 * H])
        o = jax.nn.sigmoid(gates[:, 3 * H:4 * H])
        return o * jnp.tanh(i * g)

    h1 = lstm_step(xcat, params["lstm1_wih"], params["lstm1_bih"], params["lstm1_bhh"])
    h2 = lstm_step(h1, params["lstm2_wih"], params["lstm2_bih"], params["lstm2_bhh"])
    hcat = jnp.maximum(jnp.concatenate([h1, h2, x], axis=1), 0.0)
    return jnp.tanh(hcat @ params["lin_w"].T + params["lin_b"])


def init_params(key, dim_in, dim_h):
    ks = jax.random.split(key, 8)
    f32 = jnp.float32
    return {
        # GCNConv weights stored PyTorch-style (out, in); transposed in the packer
        "gcn1_w": 0.1 * jax.random.normal(ks[0], (dim_h, dim_in), f32),
        "gcn1_b": 0.1 * jax.random.normal(ks[1], (dim_h,), f32),
        "gcn2_w": 0.1 * jax.random.normal(ks[2], (dim_h, dim_h), f32),
        "gcn2_b": 0.1 * jax.random.normal(ks[3], (dim_h,), f32),
        # BatchNorm1d defaults (eval mode)
        "bn1_gamma": jnp.ones((dim_h,), f32), "bn1_beta": jnp.zeros((dim_h,), f32),
        "bn1_mean": jnp.zeros((dim_h,), f32), "bn1_var": jnp.ones((dim_h,), f32),
        "bn2_gamma": jnp.ones((dim_h,), f32), "bn2_beta": jnp.zeros((dim_h,), f32),
        "bn2_mean": jnp.zeros((dim_h,), f32), "bn2_var": jnp.ones((dim_h,), f32),
        # LSTM layers (W_hh omitted: h0 = 0 so it never contributes with window=1)
        "lstm1_wih": 0.1 * jax.random.normal(ks[4], (4 * dim_h, 2 * dim_h), f32),
        "lstm1_bih": jnp.zeros((4 * dim_h,), f32),
        "lstm1_bhh": jnp.zeros((4 * dim_h,), f32),
        "lstm2_wih": 0.1 * jax.random.normal(ks[5], (4 * dim_h, dim_h), f32),
        "lstm2_bih": jnp.zeros((4 * dim_h,), f32),
        "lstm2_bhh": jnp.zeros((4 * dim_h,), f32),
        # final Linear(2*dim_h + dim_in -> 1)
        "lin_w": 0.1 * jax.random.normal(ks[6], (1, 2 * dim_h + dim_in), f32),
        "lin_b": 0.1 * jax.random.normal(ks[7], (1,), f32),
    }


if __name__ == "__main__":
    dim_in, dim_h = 4, 32
    key = jax.random.PRNGKey(0)
    k1, k2, k_p = jax.random.split(key, 3)
    params = init_params(k_p, dim_in, dim_h)

    def make_inputs(num_nodes, k):
        k_x, k_w = jax.random.split(k)
        xs = jax.random.normal(k_x, (num_nodes, dim_in), jnp.float32)
        src = jnp.arange(num_nodes, dtype=jnp.int32)
        dst = (src + 1) % num_nodes
        ei = jnp.stack([jnp.concatenate([src, dst]),
                        jnp.concatenate([dst, src])], axis=0)          # (2, 2N)
        ew = jax.random.uniform(k_w, (2 * num_nodes,), jnp.float32, 0.5, 1.5)
        return xs, ei, ew

    # --- 1) small graph (N=64): single fused no-grid pallas_call ---
    x, edge_index, edge_weight = make_inputs(64, k1)
    fwd_fused = jax.jit(lambda a, b, c, p: temporal_gnn_forward(a, b, c, p, dim_h=dim_h))
    out = jax.block_until_ready(fwd_fused(x, edge_index, edge_weight, params))
    ref = temporal_gnn_reference(x, edge_index, edge_weight, params, dim_h=dim_h)
    assert out.shape == (64, 1)
    assert bool(jnp.all(jnp.isfinite(out)))
    err_fused = float(jnp.max(jnp.abs(out - ref)))
    assert err_fused < 2e-2, err_fused

    # --- 2) larger graph (N=256): row-tiled 3-call path (forced), grid of 2 ---
    x, edge_index, edge_weight = make_inputs(256, k2)
    fwd_tiled = jax.jit(lambda a, b, c, p: temporal_gnn_forward(
        a, b, c, p, dim_h=dim_h, fused=False, tile_m=128))
    out = jax.block_until_ready(fwd_tiled(x, edge_index, edge_weight, params))
    ref = temporal_gnn_reference(x, edge_index, edge_weight, params, dim_h=dim_h)
    assert out.shape == (256, 1)
    assert bool(jnp.all(jnp.isfinite(out)))
    err_tiled = float(jnp.max(jnp.abs(out - ref)))
    assert err_tiled < 2e-2, err_tiled

    print("KERNEL_OK")
</pallas_src>

<mosaic_0001>
module attributes {stable_mosaic.version = 11 : i64} {
  func.func private @main(%arg0: i32) attributes {dimension_semantics = [#tpu.dimension_semantics<core_parallel>], iteration_bounds = array<i64: 2>, tpu.core_type = #tpu.core_type<sc_scalar_subcore>, window_params = []} {
    return
  }
}

module attributes {stable_mosaic.version = 11 : i64} {
  func.func private @main(%arg0: i32) attributes {dimension_semantics = [#tpu.dimension_semantics<core_parallel>], iteration_bounds = array<i64: 2>, tpu.core_type = #tpu.core_type<sc_scalar_subcore>, window_params = []} {
    return
  }
}

module attributes {stable_mosaic.version = 11 : i64} {
  func.func @_fused_kernel(%arg0: memref<64x64xbf16, #tpu.memory_space<vmem>>, %arg1: memref<64x4xf32, #tpu.memory_space<vmem>>, %arg2: memref<4x32xbf16, #tpu.memory_space<vmem>>, %arg3: memref<32x32xbf16, #tpu.memory_space<vmem>>, %arg4: memref<96x96xbf16, #tpu.memory_space<vmem>>, %arg5: memref<64x128xbf16, #tpu.memory_space<vmem>>, %arg6: memref<4x128xbf16, #tpu.memory_space<vmem>>, %arg7: memref<9x128xf32, #tpu.memory_space<vmem>>, %arg8: memref<64x128xf32, #tpu.memory_space<vmem>>) attributes {dimension_semantics = [], scalar_prefetch = 0 : i64, scratch_operands = 0 : i64, tpu.core_type = #tpu.core_type<tc>} {
    %c0 = arith.constant 0 : index
    %c0_0 = arith.constant 0 : index
    %0 = vector.load %arg0[%c0, %c0_0] : memref<64x64xbf16, #tpu.memory_space<vmem>>, vector<64x64xbf16>
    %c0_1 = arith.constant 0 : index
    %c0_2 = arith.constant 0 : index
    %1 = vector.load %arg1[%c0_1, %c0_2] : memref<64x4xf32, #tpu.memory_space<vmem>>, vector<64x4xf32>
    %2 = arith.truncf %1 : vector<64x4xf32> to vector<64x4xbf16>
    %c0_3 = arith.constant 0 : index
    %c0_4 = arith.constant 0 : index
    %3 = vector.load %arg2[%c0_3, %c0_4] : memref<4x32xbf16, #tpu.memory_space<vmem>>, vector<4x32xbf16>
    %cst = arith.constant dense<0.000000e+00> : vector<64x32xf32>
    %4 = tpu.matmul %2, %3, %cst {dimension_numbers = #tpu.dot_dimension_numbers<[1], [0], [0], [1], [0, 0, 1, 1], [], []>} : vector<64x4xbf16>, vector<4x32xbf16>, vector<64x32xf32> -> vector<64x32xf32>
    %5 = arith.truncf %4 : vector<64x32xf32> to vector<64x32xbf16>
    %cst_5 = arith.constant dense<0.000000e+00> : vector<64x32xf32>
    %6 = tpu.matmul %0, %5, %cst_5 {dimension_numbers = #tpu.dot_dimension_numbers<[1], [0], [0], [1], [0, 0, 1, 1], [], []>} : vector<64x64xbf16>, vector<64x32xbf16>, vector<64x32xf32> -> vector<64x32xf32>
    %c0_6 = arith.constant 0 : index
    %c0_7 = arith.constant 0 : index
    %7 = vector.load %arg7[%c0_6, %c0_7] : memref<9x128xf32, #tpu.memory_space<vmem>>, vector<1x32xf32>
    %8 = vector.broadcast %7 : vector<1x32xf32> to vector<64x32xf32>
    %9 = arith.addf %6, %8 : vector<64x32xf32>
    %cst_8 = arith.constant 0.000000e+00 : f32
    %10 = vector.broadcast %cst_8 : f32 to vector<64x32xf32>
    %11 = arith.maximumf %9, %10 : vector<64x32xf32>
    %c1 = arith.constant 1 : index
    %c0_9 = arith.constant 0 : index
    %12 = vector.load %arg7[%c1, %c0_9] : memref<9x128xf32, #tpu.memory_space<vmem>>, vector<1x32xf32>
    %13 = vector.broadcast %12 : vector<1x32xf32> to vector<64x32xf32>
    %14 = arith.mulf %11, %13 : vector<64x32xf32>
    %c2 = arith.constant 2 : index
    %c0_10 = arith.constant 0 : index
    %15 = vector.load %arg7[%c2, %c0_10] : memref<9x128xf32, #tpu.memory_space<vmem>>, vector<1x32xf32>
    %16 = vector.broadcast %15 : vector<1x32xf32> to vector<64x32xf32>
    %17 = arith.addf %14, %16 : vector<64x32xf32>
    %18 = arith.truncf %17 : vector<64x32xf32> to vector<64x32xbf16>
    %c0_11 = arith.constant 0 : index
    %c0_12 = arith.constant 0 : index
    %19 = vector.load %arg3[%c0_11, %c0_12] : memref<32x32xbf16, #tpu.memory_space<vmem>>, vector<32x32xbf16>
    %cst_13 = arith.constant dense<0.000000e+00> : vector<64x32xf32>
    %20 = tpu.matmul %18, %19, %cst_13 {dimension_numbers = #tpu.dot_dimension_numbers<[1], [0], [0], [1], [0, 0, 1, 1], [], []>} : vector<64x32xbf16>, vector<32x32xbf16>, vector<64x32xf32> -> vector<64x32xf32>
    %21 = arith.truncf %20 : vector<64x32xf32> to vector<64x32xbf16>
    %cst_14 = arith.constant dense<0.000000e+00> : vector<64x32xf32>
    %22 = tpu.matmul %0, %21, %cst_14 {dimension_numbers = #tpu.dot_dimension_numbers<[1], [0], [0], [1], [0, 0, 1, 1], [], []>} : vector<64x64xbf16>, vector<64x32xbf16>, vector<64x32xf32> -> vector<64x32xf32>
    %c3 = arith.constant 3 : index
    %c0_15 = arith.constant 0 : index
    %23 = vector.load %arg7[%c3, %c0_15] : memref<9x128xf32, #tpu.memory_space<vmem>>, vector<1x32xf32>
    %24 = vector.broadcast %23 : vector<1x32xf32> to vector<64x32xf32>
    %25 = arith.addf %22, %24 : vector<64x32xf32>
    %cst_16 = arith.constant 0.000000e+00 : f32
    %26 = vector.broadcast %cst_16 : f32 to vector<64x32xf32>
    %27 = arith.maximumf %25, %26 : vector<64x32xf32>
    %c4 = arith.constant 4 : index
    %c0_17 = arith.constant 0 : index
    %28 = vector.load %arg7[%c4, %c0_17] : memref<9x128xf32, #tpu.memory_space<vmem>>, vector<1x32xf32>
    %29 = vector.broadcast %28 : vector<1x32xf32> to vector<64x32xf32>
    %30 = arith.mulf %27, %29 : vector<64x32xf32>
    %c5 = arith.constant 5 : index
    %c0_18 = arith.constant 0 : index
    %31 = vector.load %arg7[%c5, %c0_18] : memref<9x128xf32, #tpu.memory_space<vmem>>, vector<1x32xf32>
    %32 = vector.broadcast %31 : vector<1x32xf32> to vector<64x32xf32>
    %33 = arith.addf %30, %32 : vector<64x32xf32>
    %34 = arith.truncf %33 : vector<64x32xf32> to vector<64x32xbf16>
    %c0_19 = arith.constant 0 : index
    %c0_20 = arith.constant 0 : index
    %35 = vector.load %arg4[%c0_19, %c0_20] : memref<96x96xbf16, #tpu.memory_space<vmem>>, vector<32x96xbf16>
    %cst_21 = arith.constant dense<0.000000e+00> : vector<64x96xf32>
    %36 = tpu.matmul %18, %35, %cst_21 {dimension_numbers = #tpu.dot_dimension_numbers<[1], [0], [0], [1], [0, 0, 1, 1], [], []>} : vector<64x32xbf16>, vector<32x96xbf16>, vector<64x96xf32> -> vector<64x96xf32>
    %c32 = arith.constant 32 : index
    %c0_22 = arith.constant 0 : index
    %37 = vector.load %arg4[%c32, %c0_22] : memref<96x96xbf16, #tpu.memory_space<vmem>>, vector<32x96xbf16>
    %cst_23 = arith.constant dense<0.000000e+00> : vector<64x96xf32>
    %38 = tpu.matmul %34, %37, %cst_23 {dimension_numbers = #tpu.dot_dimension_numbers<[1], [0], [0], [1], [0, 0, 1, 1], [], []>} : vector<64x32xbf16>, vector<32x96xbf16>, vector<64x96xf32> -> vector<64x96xf32>
    %39 = arith.addf %36, %38 : vector<64x96xf32>
    %c6 = arith.constant 6 : index
    %c0_24 = arith.constant 0 : index
    %40 = vector.load %arg7[%c6, %c0_24] : memref<9x128xf32, #tpu.memory_space<vmem>>, vector<1x96xf32>
    %41 = vector.broadcast %40 : vector<1x96xf32> to vector<64x96xf32>
    %42 = arith.addf %39, %41 : vector<64x96xf32>
    %43 = vector.extract_strided_slice %42 {offsets = [0, 0], sizes = [64, 32], strides = [1, 1]} : vector<64x96xf32> to vector<64x32xf32>
    %44 = arith.negf %43 : vector<64x32xf32>
    %45 = math.exp %44 : vector<64x32xf32>
    %cst_25 = arith.constant 1.000000e+00 : f32
    %46 = vector.broadcast %cst_25 : f32 to vector<64x32xf32>
    %47 = arith.addf %46, %45 : vector<64x32xf32>
    %48 = arith.divf %46, %47 : vector<64x32xf32>
    %49 = vector.extract_strided_slice %42 {offsets = [0, 32], sizes = [64, 32], strides = [1, 1]} : vector<64x96xf32> to vector<64x32xf32>
    %50 = math.tanh %49 : vector<64x32xf32>
    %51 = vector.extract_strided_slice %42 {offsets = [0, 64], sizes = [64, 32], strides = [1, 1]} : vector<64x96xf32> to vector<64x32xf32>
    %52 = arith.negf %51 : vector<64x32xf32>
    %53 = math.exp %52 : vector<64x32xf32>
    %cst_26 = arith.constant 1.000000e+00 : f32
    %54 = vector.broadcast %cst_26 : f32 to vector<64x32xf32>
    %55 = arith.addf %54, %53 : vector<64x32xf32>
    %56 = arith.divf %54, %55 : vector<64x32xf32>
    %57 = arith.mulf %48, %50 : vector<64x32xf32>
    %58 = math.tanh %57 : vector<64x32xf32>
    %59 = arith.mulf %56, %58 : vector<64x32xf32>
    %60 = arith.truncf %59 : vector<64x32xf32> to vector<64x32xbf16>
    %c64 = arith.constant 64 : index
    %c0_27 = arith.constant 0 : index
    %61 = vector.load %arg4[%c64, %c0_27] : memref<96x96xbf16, #tpu.memory_space<vmem>>, vector<32x96xbf16>
    %cst_28 = arith.constant dense<0.000000e+00> : vector<64x96xf32>
    %62 = tpu.matmul %60, %61, %cst_28 {dimension_numbers = #tpu.dot_dimension_numbers<[1], [0], [0], [1], [0, 0, 1, 1], [], []>} : vector<64x32xbf16>, vector<32x96xbf16>, vector<64x96xf32> -> vector<64x96xf32>
    %c7 = arith.constant 7 : index
    %c0_29 = arith.constant 0 : index
    %63 = vector.load %arg7[%c7, %c0_29] : memref<9x128xf32, #tpu.memory_space<vmem>>, vector<1x96xf32>
    %64 = vector.broadcast %63 : vector<1x96xf32> to vector<64x96xf32>
    %65 = arith.addf %62, %64 : vector<64x96xf32>
    %66 = vector.extract_strided_slice %65 {offsets = [0, 0], sizes = [64, 32], strides = [1, 1]} : vector<64x96xf32> to vector<64x32xf32>
    %67 = arith.negf %66 : vector<64x32xf32>
    %68 = math.exp %67 : vector<64x32xf32>
    %cst_30 = arith.constant 1.000000e+00 : f32
    %69 = vector.broadcast %cst_30 : f32 to vector<64x32xf32>
    %70 = arith.addf %69, %68 : vector<64x32xf32>
    %71 = arith.divf %69, %70 : vector<64x32xf32>
    %72 = vector.extract_strided_slice %65 {offsets = [0, 32], sizes = [64, 32], strides = [1, 1]} : vector<64x96xf32> to vector<64x32xf32>
    %73 = math.tanh %72 : vector<64x32xf32>
    %74 = vector.extract_strided_slice %65 {offsets = [0, 64], sizes = [64, 32], strides = [1, 1]} : vector<64x96xf32> to vector<64x32xf32>
    %75 = arith.negf %74 : vector<64x32xf32>
    %76 = math.exp %75 : vector<64x32xf32>
    %cst_31 = arith.constant 1.000000e+00 : f32
    %77 = vector.broadcast %cst_31 : f32 to vector<64x32xf32>
    %78 = arith.addf %77, %76 : vector<64x32xf32>
    %79 = arith.divf %77, %78 : vector<64x32xf32>
    %80 = arith.mulf %71, %73 : vector<64x32xf32>
    %81 = math.tanh %80 : vector<64x32xf32>
    %82 = arith.mulf %79, %81 : vector<64x32xf32>
    %cst_32 = arith.constant 0.000000e+00 : f32
    %83 = vector.broadcast %cst_32 : f32 to vector<64x32xf32>
    %84 = arith.maximumf %59, %83 : vector<64x32xf32>
    %85 = arith.truncf %84 : vector<64x32xf32> to vector<64x32xbf16>
    %c0_33 = arith.constant 0 : index
    %c0_34 = arith.constant 0 : index
    %86 = vector.load %arg5[%c0_33, %c0_34] : memref<64x128xbf16, #tpu.memory_space<vmem>>, vector<32x128xbf16>
    %cst_35 = arith.constant dense<0.000000e+00> : vector<64x128xf32>
    %87 = tpu.matmul %85, %86, %cst_35 {dimension_numbers = #tpu.dot_dimension_numbers<[1], [0], [0], [1], [0, 0, 1, 1], [], []>} : vector<64x32xbf16>, vector<32x128xbf16>, vector<64x128xf32> -> vector<64x128xf32>
    %cst_36 = arith.constant 0.000000e+00 : f32
    %88 = vector.broadcast %cst_36 : f32 to vector<64x32xf32>
    %89 = arith.maximumf %82, %88 : vector<64x32xf32>
    %90 = arith.truncf %89 : vector<64x32xf32> to vector<64x32xbf16>
    %c32_37 = arith.constant 32 : index
    %c0_38 = arith.constant 0 : index
    %91 = vector.load %arg5[%c32_37, %c0_38] : memref<64x128xbf16, #tpu.memory_space<vmem>>, vector<32x128xbf16>
    %cst_39 = arith.constant dense<0.000000e+00> : vector<64x128xf32>
    %92 = tpu.matmul %90, %91, %cst_39 {dimension_numbers = #tpu.dot_dimension_numbers<[1], [0], [0], [1], [0, 0, 1, 1], [], []>} : vector<64x32xbf16>, vector<32x128xbf16>, vector<64x128xf32> -> vector<64x128xf32>
    %93 = arith.addf %87, %92 : vector<64x128xf32>
    %cst_40 = arith.constant 0.000000e+00 : bf16
    %94 = vector.broadcast %cst_40 : bf16 to vector<64x4xbf16>
    %95 = arith.maximumf %2, %94 : vector<64x4xbf16>
    %c0_41 = arith.constant 0 : index
    %c0_42 = arith.constant 0 : index
    %96 = vector.load %arg6[%c0_41, %c0_42] : memref<4x128xbf16, #tpu.memory_space<vmem>>, vector<4x128xbf16>
    %cst_43 = arith.constant dense<0.000000e+00> : vector<64x128xf32>
    %97 = tpu.matmul %95, %96, %cst_43 {dimension_numbers = #tpu.dot_dimension_numbers<[1], [0], [0], [1], [0, 0, 1, 1], [], []>} : vector<64x4xbf16>, vector<4x128xbf16>, vector<64x128xf32> -> vector<64x128xf32>
    %98 = arith.addf %93, %97 : vector<64x128xf32>
    %c8 = arith.constant 8 : index
    %c0_44 = arith.constant 0 : index
    %99 = vector.load %arg7[%c8, %c0_44] : memref<9x128xf32, #tpu.memory_space<vmem>>, vector<1x128xf32>
    %100 = vector.broadcast %99 : vector<1x128xf32> to vector<64x128xf32>
    %101 = arith.addf %98, %100 : vector<64x128xf32>
    %102 = math.tanh %101 : vector<64x128xf32>
    %c0_45 = arith.constant 0 : index
    %c0_46 = arith.constant 0 : index
    %103 = vector.load %arg8[%c0_45, %c0_46] : memref<64x128xf32, #tpu.memory_space<vmem>>, vector<64x128xf32>
    tpu.vector_store %arg8[%c0_45, %c0_46], %102 {strides = array<i32>} : memref<64x128xf32, #tpu.memory_space<vmem>>, vector<64x128xf32>,
    return
  }
}

</mosaic_0001>

<bundles_post_ra>
// kernel: _lambda_.1
= control target key start
LH: loop header
LB: loop body
LE: loop exit
PB: predicated region body
PF: predicated region fallthrough
CT: control target
= control target key end

     0   :  { %vm64_vm0 = vcmask 1041408   ;;  %vm51_vm1 = vcmask 31744   ;;  %vm162_vm2 = vcmask 523264   ;;  %vm294_vm3 = vcmask 261120   ;;  %s1897_s29 = smov 96   ;;  %s1898_s30 = smov 64   ;;  %s2238_s2 = inlined_call_operand.vmem [shape: bf16[4,32], index: 2, kind: input, shape index: {}]   ;;  %s2239_s1 = inlined_call_operand.vmem [shape: f32[64,4], index: 1, kind: input, shape index: {}]   ;;  %s2240_s0 = inlined_call_operand.vmem [shape: bf16[64,64], index: 0, kind: input, shape index: {}]   ;;  %s2241_s3 = inlined_call_operand.vmem [shape: bf16[32,32], index: 3, kind: input, shape index: {}]   ;;  %s2242_s7 = inlined_call_operand.vmem [shape: f32[9,128], index: 7, kind: input, shape index: {}]   ;;  %s2243_s4 = inlined_call_operand.vmem [shape: bf16[96,96], index: 4, kind: input, shape index: {}]   ;;  %s2244_s5 = inlined_call_operand.vmem [shape: bf16[64,128], index: 5, kind: input, shape index: {}]   ;;  %s2245_s6 = inlined_call_operand.vmem [shape: bf16[4,128], index: 6, kind: input, shape index: {}]   ;;  %s2246_s8 = inlined_call_operand.vmem [shape: f32[64,128], index: 8, kind: output, shape index: {}]  }
   0x1   :  { %v50_v0 = vld [vmem:[%s2238_s2] sm:$0x3]  ;;  %v39_v2 = vld [vmem:[%s2239_s1 + $0x8] sm:$0xff]  ;;  %v40_v5 = vld [vmem:[%s2239_s1 + $0x10] sm:$0xff] }
   0x2   :  { %v38_v1 = vld [vmem:[%s2239_s1] sm:$0xff]  ;;  %1732 = vmatprep.subr.msk.bf16.mxu0 %vm64_vm0, %v50_v0  ;;  %v66_v3 = vsel %vm64_vm0, %v50_v0, 0  ;;  %v41_v6 = vld [vmem:[%s2239_s1 + $0x18] sm:$0xff]  ;;  %v43_v9 = vld [vmem:[%s2239_s1 + $0x28] sm:$0xff] }
   0x3   :  { %v1956_v4 = vpack.c.bf16 %v39_v2, %v38_v1  ;;  %v42_v7 = vld [vmem:[%s2239_s1 + $0x20] sm:$0xff]  ;;  %1577 = vmatpush3.bf16.msra.mxu0 %v66_v3  ;;  %v1967_v8 = vpack.c.bf16 %v41_v6, %v40_v5  ;;  %v44_v11 = vld [vmem:[%s2239_s1 + $0x30] sm:$0xff]  ;;  %v45_v12 = vld [vmem:[%s2239_s1 + $0x38] sm:$0xff] }
   0x4   :  { %v1974_v10 = vpack.c.bf16 %v43_v9, %v42_v7  ;;  %v1986_v13 = vpack.c.bf16 %v45_v12, %v44_v11  ;;  %v1993_v14 = vld [vmem:[%s2240_s0] sm:$0xff]   ;;  %v1739_v15 = vld [vmem:[%s2240_s0 + $0x10] sm:$0xff]   ;;  %v2007_v29 = vld [vmem:[%s2240_s0 + $0x8] sm:$0xff]  }
   0x5   :  { %1578 = vmatprep.mubr.msk.bf16.mxu0 %vm51_vm1, %v1956_v4  ;;  %1626 = vmatprep.mubr.msk.bf16.mxu1 %vm162_vm2, %v1739_v15  ;;  %v1741_v28 = vld [vmem:[%s2241_s3] sm:$0xff]   ;;  %v2015_v30 = vld [vmem:[%s2240_s0 + $0x18] sm:$0xff]   ;;  %v1742_v31 = vld [vmem:[%s2241_s3 + $0x8] sm:$0xff]  }
   0x6   :  { %1579 = vmatmul.mubr.msk.bf16.vlgmr.msra.gmra.mrb[0].mxu0 %vm51_vm1, %v1967_v8  ;;  %v1437_v32 = vld [vmem:[%s2242_s7] ss:$0 sm:$0xff]  ;;  %v1446_v36 = vld [vmem:[%s2242_s7 + $0x1] ss:$0 sm:$0xff]  ;;  %v1447_v46 = vld [vmem:[%s2242_s7 + $0x2] ss:$0 sm:$0xff] }
   0x7   :  { %1582 = vmatprep.mubr.msk.bf16.mxu0 %vm51_vm1, %v1974_v10 }
   0xe   :  { %1583 = vmatmul.mubr.msk.bf16.gmra.mrb[4].mxu0 %vm51_vm1, %v1986_v13 }
   0xf   :  { %1594 = vmatprep.mubr.msk.bf16.mxu0 %vm162_vm2, %v1993_v14 }
  0xd9   :  { %v1580_v16 = vpop.f32.mrb[0].mxu0 }
  0xda   :  { %v102_v17 = vpop.f32.mrb[1].mxu0 }
  0xdb   :  { %v1581_v18 = vpop.f32.mrb[2].mxu0 }
  0xdc   :  { %v134_v19 = vpack.c.bf16 %v1581_v18, %v1580_v16  ;;  %v105_v20 = vpop.f32.mrb[3].mxu0 }
  0xdd   :  { %v133_v21 = vpack.c.bf16 %v105_v20, %v102_v17 }
  0xdf   :  { %1586 = vmatprep.subr.bf16.mxu0 %v133_v21 }
  0xe0   :  { %1587 = vmatpush3.bf16.msra.mxu0 %v133_v21 }
  0xe1   :  { %v1584_v22 = vpop.f32.mrb[4].mxu0  ;;  %1588 = vmatprep.subr.bf16.mxu0 %v134_v19 }
  0xe2   :  { %v118_v23 = vpop.f32.mrb[5].mxu0 }
  0xe3   :  { %v1585_v24 = vpop.f32.mrb[6].mxu0 }
  0xe4   :  { %v136_v25 = vpack.c.bf16 %v1585_v24, %v1584_v22  ;;  %v121_v26 = vpop.f32.mrb[7].mxu0  ;;  %1589 = vmatpush3.bf16.msra.mxu0 %v134_v19 }
  0xe5   :  { %v135_v27 = vpack.c.bf16 %v121_v26, %v118_v23 }
  0xe7   :  { %1590 = vmatprep.subr.bf16.mxu0 %v135_v27 }
  0xe8   :  { %1591 = vmatpush3.bf16.msra.mxu0 %v135_v27 }
  0xe9   :  { %1592 = vmatprep.subr.bf16.mxu0 %v136_v25 }
  0xec   :  { %1593 = vmatpush3.bf16.msra.mxu0 %v136_v25 }
  0xed   :  { %1602 = vmatprep.subr.bf16.mxu0 %v1741_v28 }
  0xef   :  { %1595 = vmatmul.mubr.msk.bf16.vlgmr.msra.gmra.mrb[8].mxu0 %vm162_vm2, %v2007_v29 }
  0xf0   :  { %1598 = vmatprep.mubr.msk.bf16.mxu0 %vm162_vm2, %v1739_v15  ;;  %1603 = vmatpush3.bf16.msra.mxu0 %v1741_v28 }
  0xf1   :  { %1604 = vmatprep.subr.bf16.mxu0 %v1742_v31 }
  0xf4   :  { %1605 = vmatpush3.bf16.msra.mxu0 %v1742_v31 }
  0xf7   :  { %1599 = vmatmul.mubr.msk.bf16.gmra.mrb[12].mxu0 %vm162_vm2, %v2015_v30 }
 0x1c2   :  { %v1596_v33 = vpop.f32.mrb[8].mxu0 }
 0x1c3   :  { %v218_v34 = vadd.f32 %v1596_v33, %v1437_v32  ;;  %v209_v35 = vpop.f32.mrb[9].mxu0  ;;  %v1743_v33 = vld [vmem:[%s2243_s4 + $0x10] sm:$0xff]  }
 0x1c4   :  { %v210_v37 = vadd.f32 %v1437_v32, %v209_v35  ;;  %v1597_v38 = vpop.f32.mrb[10].mxu0  ;;  %v1745_v35 = vld [vmem:[%s2243_s4] sm:$0xff]  }
 0x1c5   :  { %v242_v39 = vmax.f32 %v218_v34, 0.0  ;;  %v221_v40 = vadd.f32 %v1597_v38, %v1437_v32  ;;  %v212_v41 = vpop.f32.mrb[11].mxu0  ;;  %v1744_v34 = vld [vmem:[%s2243_s4 + $0x18] sm:$0xff]  }
 0x1c6   :  { %v240_v42 = vmax.f32 %v210_v37, 0.0  ;;  %v213_v43 = vadd.f32 %v1437_v32, %v212_v41  ;;  %v1459_v41 = vld [vmem:[%s2242_s7 + $0x4] ss:$0 sm:$0xff] }
 0x1c7   :  { %v255_v44 = vmul.f32 %v1446_v36, %v242_v39  ;;  %v243_v45 = vmax.f32 %v221_v40, 0.0 }
 0x1c8   :  { %v253_v47 = vmul.f32 %v1446_v36, %v240_v42  ;;  %v241_v48 = vmax.f32 %v213_v43, 0.0 }
 0x1c9   :  { %v256_v49 = vmul.f32 %v1446_v36, %v243_v45  ;;  %v268_v52 = vadd.f32 %v1447_v46, %v255_v44 }
 0x1ca   :  { %v254_v50 = vmul.f32 %v1446_v36, %v241_v48  ;;  %v1600_v51 = vpop.f32.mrb[12].mxu0  ;;  %v266_v56 = vadd.f32 %v1447_v46, %v253_v47 }
 0x1cb   :  { %v269_v53 = vadd.f32 %v1447_v46, %v256_v49  ;;  %v234_v54 = vadd.f32 %v1600_v51, %v1437_v32  ;;  %v225_v55 = vpop.f32.mrb[13].mxu0 }
 0x1cc   :  { %v267_v57 = vadd.f32 %v1447_v46, %v254_v50  ;;  %v226_v58 = vadd.f32 %v1437_v32, %v225_v55  ;;  %v1601_v59 = vpop.f32.mrb[14].mxu0 }
 0x1cd   :  { %v2031_v60 = vpack.c.bf16 %v269_v53, %v268_v52  ;;  %v246_v61 = vmax.f32 %v234_v54, 0.0  ;;  %v237_v62 = vadd.f32 %v1601_v59, %v1437_v32  ;;  %v228_v63 = vpop.f32.mrb[15].mxu0 }
 0x1ce   :  { %v2033_v0 = vpack.c.bf16 %v267_v57, %v266_v56  ;;  %v244_v1 = vmax.f32 %v226_v58, 0.0  ;;  %v229_v2 = vadd.f32 %v1437_v32, %v228_v63 }
 0x1cf   :  { %v259_v3 = vmul.f32 %v1446_v36, %v246_v61  ;;  %v247_v5 = vmax.f32 %v237_v62, 0.0  ;;  %v1460_v61 = vld [vmem:[%s2242_s7 + $0x5] ss:$0 sm:$0xff] }
 0x1d0   :  { %v257_v6 = vmul.f32 %v1446_v36, %v244_v1  ;;  %v245_v7 = vmax.f32 %v229_v2, 0.0  ;;  %1606 = vmatprep.mubr.msk.bf16.mxu0 %vm294_vm3, %v2033_v0 }
 0x1d1   :  { %v260_v9 = vmul.f32 %v1446_v36, %v247_v5  ;;  %1607 = vmatmul.mubr.msk.bf16.vlgmr.msra.gmra.mrb[16].mxu0 %vm294_vm3, %v2031_v60  ;;  %v272_v12 = vadd.f32 %v1447_v46, %v259_v3 }
 0x1d2   :  { %v258_v11 = vmul.f32 %v1446_v36, %v245_v7  ;;  %v270_v16 = vadd.f32 %v1447_v46, %v257_v6 }
 0x1d3   :  { %v273_v15 = vadd.f32 %v1447_v46, %v260_v9 }
 0x1d4   :  { %v271_v17 = vadd.f32 %v1447_v46, %v258_v11 }
 0x1d5   :  { %v2039_v18 = vpack.c.bf16 %v273_v15, %v272_v12 }
 0x1d6   :  { %v2041_v19 = vpack.c.bf16 %v271_v17, %v270_v16 }
 0x1d8   :  { %1610 = vmatprep.mubr.msk.bf16.mxu0 %vm294_vm3, %v2041_v19 }
 0x1d9   :  { %1611 = vmatmul.mubr.msk.bf16.gmra.mrb[20].mxu0 %vm294_vm3, %v2039_v18 }
 0x1da   :  { %1622 = vmatprep.mubr.msk.bf16.mxu0 %vm162_vm2, %v1993_v14 }
 0x2a4   :  { %v1608_v20 = vpop.f32.mrb[16].mxu0 }
 0x2a5   :  { %v341_v21 = vpop.f32.mrb[17].mxu0 }
 0x2a6   :  { %v1609_v22 = vpop.f32.mrb[18].mxu0 }
 0x2a7   :  { %v373_v23 = vpack.c.bf16 %v1609_v22, %v1608_v20  ;;  %v344_v24 = vpop.f32.mrb[19].mxu0 }
 0x2a8   :  { %v372_v25 = vpack.c.bf16 %v344_v24, %v341_v21 }
 0x2aa   :  { %1614 = vmatprep.subr.bf16.mxu0 %v372_v25  ;;  %1700 = vmatprep.subr.bf16.mxu1 %v372_v25 }
 0x2ab   :  { %1615 = vmatpush3.bf16.msra.mxu0 %v372_v25  ;;  %1704 = vmatpush3.bf16.msra.mxu1 %v372_v25 }
 0x2ac   :  { %v1612_v26 = vpop.f32.mrb[20].mxu0  ;;  %1616 = vmatprep.subr.bf16.mxu0 %v373_v23  ;;  %1701 = vmatprep.subr.bf16.mxu1 %v373_v23 }
 0x2ad   :  { %v357_v27 = vpop.f32.mrb[21].mxu0 }
 0x2ae   :  { %v1613_v28 = vpop.f32.mrb[22].mxu0 }
 0x2af   :  { %v375_v31 = vpack.c.bf16 %v1613_v28, %v1612_v26  ;;  %v360_v32 = vpop.f32.mrb[23].mxu0  ;;  %1617 = vmatpush3.bf16.msra.mxu0 %v373_v23  ;;  %1705 = vmatpush3.bf16.msra.mxu1 %v373_v23  ;;  %v1746_v26 = vld [vmem:[%s2243_s4 + $0x8] sm:$0xff]  }
 0x2b0   :  { %v374_v14 = vpack.c.bf16 %v360_v32, %v357_v27  ;;  %v1473_v27 = vld [vmem:[%s2242_s7 + $0x6] ss:$0 sm:$0xff] }
 0x2b2   :  { %1618 = vmatprep.subr.bf16.mxu0 %v374_v14  ;;  %1702 = vmatprep.subr.bf16.mxu1 %v374_v14 }
 0x2b3   :  { %1619 = vmatpush3.bf16.msra.mxu0 %v374_v14  ;;  %1706 = vmatpush3.bf16.msra.mxu1 %v374_v14 }
 0x2b4   :  { %1620 = vmatprep.subr.bf16.mxu0 %v375_v31  ;;  %1703 = vmatprep.subr.bf16.mxu1 %v375_v31 }
 0x2b7   :  { %1621 = vmatpush3.bf16.msra.mxu0 %v375_v31  ;;  %1707 = vmatpush3.bf16.msra.mxu1 %v375_v31 }
 0x2b8   :  { %1630 = vmatprep.subr.bf16.mxu0 %v1743_v33 }
 0x2ba   :  { %1623 = vmatmul.mubr.msk.bf16.vlgmr.msra.gmra.mrb[24].mxu0 %vm162_vm2, %v2007_v29  ;;  %1627 = vmatmul.mubr.msk.bf16.vlgmr.msra.gmra.mrb[0].mxu1 %vm162_vm2, %v2015_v30  ;;  %v1454_v29 = vld [vmem:[%s2242_s7 + $0x3] ss:$0 sm:$0xff] }
 0x2bb   :  { %1631 = vmatpush3.bf16.msra.mxu0 %v1743_v33 }
 0x2bc   :  { %1632 = vmatprep.subr.bf16.mxu0 %v1744_v34 }
 0x2bf   :  { %1633 = vmatpush3.bf16.msra.mxu0 %v1744_v34 }
 0x2c0   :  { %1642 = vmatprep.subr.bf16.mxu0 %v1745_v35 }
 0x38d   :  { %v1624_v30 = vpop.f32.mrb[24].mxu0  ;;  %v1628_v36 = vpop.f32.mrb[0].mxu1 }
 0x38e   :  { %v424_v37 = vadd.f32 %v1624_v30, %v1454_v29  ;;  %v415_v38 = vpop.f32.mrb[25].mxu0  ;;  %v440_v39 = vadd.f32 %v1628_v36, %v1454_v29  ;;  %v431_v40 = vpop.f32.mrb[1].mxu1 }
 0x38f   :  { %v416_v42 = vadd.f32 %v1454_v29, %v415_v38  ;;  %v1625_v43 = vpop.f32.mrb[26].mxu0  ;;  %v432_v44 = vadd.f32 %v1454_v29, %v431_v40  ;;  %v1629_v45 = vpop.f32.mrb[2].mxu1 }
 0x390   :  { %v448_v46 = vmax.f32 %v424_v37, 0.0  ;;  %v427_v47 = vadd.f32 %v1625_v43, %v1454_v29  ;;  %v418_v48 = vpop.f32.mrb[27].mxu0  ;;  %v452_v49 = vmax.f32 %v440_v39, 0.0  ;;  %v443_v50 = vadd.f32 %v1629_v45, %v1454_v29  ;;  %v434_v51 = vpop.f32.mrb[3].mxu1 }
 0x391   :  { %v446_v52 = vmax.f32 %v416_v42, 0.0  ;;  %v419_v53 = vadd.f32 %v1454_v29, %v418_v48  ;;  %v450_v54 = vmax.f32 %v432_v44, 0.0  ;;  %v435_v55 = vadd.f32 %v1454_v29, %v434_v51 }
 0x392   :  { %v461_v56 = vmul.f32 %v1459_v41, %v448_v46  ;;  %v449_v57 = vmax.f32 %v427_v47, 0.0  ;;  %v465_v58 = vmul.f32 %v1459_v41, %v452_v49  ;;  %v453_v59 = vmax.f32 %v443_v50, 0.0 }
 0x393   :  { %v459_v62 = vmul.f32 %v1459_v41, %v446_v52  ;;  %v447_v63 = vmax.f32 %v419_v53, 0.0  ;;  %v463_v1 = vmul.f32 %v1459_v41, %v450_v54  ;;  %v451_v2 = vmax.f32 %v435_v55, 0.0 }
 0x394   :  { %v462_v3 = vmul.f32 %v1459_v41, %v449_v57  ;;  %v478_v5 = vadd.f32 %v1460_v61, %v465_v58  ;;  %v466_v6 = vmul.f32 %v1459_v41, %v453_v59  ;;  %v474_v12 = vadd.f32 %v1460_v61, %v461_v56 }
 0x395   :  { %v460_v7 = vmul.f32 %v1459_v41, %v447_v63  ;;  %v476_v9 = vadd.f32 %v1460_v61, %v463_v1  ;;  %v464_v11 = vmul.f32 %v1459_v41, %v451_v2  ;;  %v472_v17 = vadd.f32 %v1460_v61, %v459_v62 }
 0x396   :  { %v475_v15 = vadd.f32 %v1460_v61, %v462_v3  ;;  %v479_v16 = vadd.f32 %v1460_v61, %v466_v6 }
 0x397   :  { %v473_v20 = vadd.f32 %v1460_v61, %v460_v7  ;;  %v477_v21 = vadd.f32 %v1460_v61, %v464_v11 }
 0x398   :  { %v481_v22 = vpack.c.bf16 %v475_v15, %v474_v12  ;;  %v483_v23 = vpack.c.bf16 %v479_v16, %v478_v5 }
 0x399   :  { %v480_v24 = vpack.c.bf16 %v473_v20, %v472_v17  ;;  %v482_v25 = vpack.c.bf16 %v477_v21, %v476_v9 }
 0x39b   :  { %1634 = vmatprep.mubr.msk.bf16.mxu0 %vm294_vm3, %v480_v24 }
 0x39c   :  { %1635 = vmatmul.mubr.msk.bf16.vlgmr.msra.gmra.mrb[28].mxu0 %vm294_vm3, %v481_v22 }
 0x39d   :  { %1643 = vmatpush3.bf16.msra.mxu0 %v1745_v35  ;;  %1638 = vmatprep.mubr.msk.bf16.mxu0 %vm294_vm3, %v482_v25 }
 0x39e   :  { %1644 = vmatprep.subr.bf16.mxu0 %v1746_v26 }
 0x3a1   :  { %1645 = vmatpush3.bf16.msra.mxu0 %v1746_v26 }
 0x3a4   :  { %1639 = vmatmul.mubr.msk.bf16.gmra.mrb[32].mxu0 %vm294_vm3, %v483_v23 }
 0x3a5   :  { %1646 = vmatprep.mubr.msk.bf16.mxu0 %vm294_vm3, %v2033_v0 }
 0x3ac   :  { %1647 = vmatmul.mubr.msk.bf16.vlgmr.msra.gmra.mrb[28].mxu0 %vm294_vm3, %v2031_v60 }
 0x3ad   :  { %1650 = vmatprep.mubr.msk.bf16.mxu0 %vm294_vm3, %v2041_v19 }
 0x3b4   :  { %1651 = vmatmul.mubr.msk.bf16.gmra.mrb[32].mxu0 %vm294_vm3, %v2039_v18 }
 0x47f   :  { %v1648_v28 = vpop.f32.mrb[28].mxu0 }
 0x480   :  { %v665_v31 = vadd.f32 %v1648_v28, %v1473_v27  ;;  %v627_v32 = vpop.f32.mrb[29].mxu0 }
 0x481   :  { %v663_v14 = vadd.f32 %v1473_v27, %v627_v32  ;;  %v1649_v33 = vpop.f32.mrb[30].mxu0 }
 0x482   :  { %1753 = vtanh.f32 %v665_v31  ;;  %v630_v0 = vpop.f32.mrb[31].mxu0  ;;  %v666_v34 = vadd.f32 %v1649_v33, %v1473_v27  ;;  %v1476_v48 = vmul.f32 -1.442695, %v665_v31 }
 0x483   :  { %1755 = vtanh.f32 %v663_v14  ;;  %v664_v60 = vadd.f32 %v1473_v27, %v630_v0  ;;  %v1474_v47 = vmul.f32 -1.442695, %v663_v14 }
 0x484   :  { %1757 = vtanh.f32 %v666_v34  ;;  %v1477_v50 = vmul.f32 -1.442695, %v666_v34 }
 0x485   :  { %1759 = vtanh.f32 %v664_v60  ;;  %v1475_v49 = vmul.f32 -1.442695, %v664_v60 }
 0x487   :  { %v1652_v35 = vpop.f32.mrb[32].mxu0 }
 0x488   :  { %v643_v19 = vpop.f32.mrb[33].mxu0  ;;  %v669_v38 = vadd.f32 %v1652_v35, %v1473_v27 }
 0x489   :  { %v667_v29 = vadd.f32 %v1473_v27, %v643_v19  ;;  %v1653_v18 = vpop.f32.mrb[34].mxu0 }
 0x48a   :  { %v646_v30 = vpop.f32.mrb[35].mxu0  ;;  %v670_v42 = vadd.f32 %v1653_v18, %v1473_v27  ;;  %v1480_v53 = vmul.f32 -1.442695, %v669_v38 }
 0x48b   :  { %1761 = vtanh.f32 %v667_v29  ;;  %v668_v39 = vadd.f32 %v1473_v27, %v646_v30  ;;  %v1478_v51 = vmul.f32 -1.442695, %v667_v29 }
 0x48c   :  { %v1754_v36 = vpop.eup %1753  ;;  %1763 = vtanh.f32 %v669_v38  ;;  %v1481_v61 = vmul.f32 -1.442695, %v670_v42 }
 0x48d   :  { %v1756_v37 = vpop.eup %1755  ;;  %739 = vrot.lane.b32.xlu1 %v1754_v36, %s1897_s29  ;;  %1765 = vtanh.f32 %v668_v39  ;;  %v1479_v55 = vmul.f32 -1.442695, %v668_v39 }
 0x48e   :  { %735 = vrot.lane.b32.xlu0 %v1756_v37, %s1897_s29  ;;  %v1758_v40 = vpop.eup %1757  ;;  %1767 = vtanh.f32 %v670_v42 }
 0x48f   :  { %v1760_v41 = vpop.eup %1759  ;;  %1769 = vpow2.f32 %v1474_v47 }
 0x490   :  { %1771 = vpow2.f32 %v1476_v48 }
 0x491   :  { %741 = vrot.lane.b32.xlu1 %v1758_v40, %s1897_s29  ;;  %1773 = vpow2.f32 %v1475_v49  ;;  %v1747_v40 = vld [vmem:[%s2243_s4 + $0x20] sm:$0xff]  }
 0x492   :  { %737 = vrot.lane.b32.xlu0 %v1760_v41, %s1897_s29  ;;  %1775 = vpow2.f32 %v1477_v50  ;;  %1654 = vmatprep.subr.bf16.mxu1 %v1747_v40 }
 0x493   :  { %1777 = vpow2.f32 %v1478_v51  ;;  %1655 = vmatpush3.bf16.msra.mxu1 %v1747_v40 }
 0x494   :  { %1779 = vpow2.f32 %v1480_v53 }
 0x495   :  { %v1762_v43 = vpop.eup %1761  ;;  %1781 = vpow2.f32 %v1479_v55 }
 0x496   :  { %743 = vrot.lane.b32.xlu0 %v1762_v43, %s1897_s29  ;;  %v1764_v44 = vpop.eup %1763 }
 0x497   :  { %v1766_v45 = vpop.eup %1765 }
 0x498   :  { %745 = vrot.lane.b32.xlu1 %v1766_v45, %s1897_s29  ;;  %v1768_v46 = vpop.eup %1767 }
 0x499   :  { %v1770_v52 = vpop.eup %1769 }
 0x49a   :  { %747 = vrot.lane.b32.xlu0 %v1764_v44, %s1897_s29  ;;  %v1772_v54 = vpop.eup %1771  ;;  %v695_v56 = vadd.f32 1.0, %v1770_v52  ;;  %v1748_v44 = vld [vmem:[%s2243_s4 + $0x28] sm:$0xff]  }
 0x49b   :  { %v697_v57 = vadd.f32 1.0, %v1772_v54  ;;  %v1774_v58 = vpop.eup %1773  ;;  %1656 = vmatprep.subr.bf16.mxu1 %v1748_v44 }
 0x49c   :  { %749 = vrot.lane.b32.xlu1 %v1768_v46, %s1897_s29  ;;  %v1776_v59 = vpop.eup %1775  ;;  %1783 = vrcp.f32 %v695_v56  ;;  %v696_v62 = vadd.f32 1.0, %v1774_v58  ;;  %1657 = vmatpush3.bf16.msra.mxu1 %v1748_v44 }
 0x49d   :  { %1785 = vrcp.f32 %v697_v57  ;;  %v1778_v63 = vpop.eup %1777  ;;  %v698_v1 = vadd.f32 1.0, %v1776_v59 }
 0x49e   :  { %1787 = vpow2.f32 %v1481_v61  ;;  %v699_v2 = vadd.f32 1.0, %v1778_v63  ;;  %v1780_v3 = vpop.eup %1779 }
 0x49f   :  { %1789 = vrcp.f32 %v696_v62  ;;  %v1782_v5 = vpop.eup %1781  ;;  %v701_v9 = vadd.f32 1.0, %v1780_v3 }
 0x4a0   :  { %1791 = vrcp.f32 %v698_v1  ;;  %v700_v16 = vadd.f32 1.0, %v1782_v5 }
 0x4a1   :  { %1793 = vrcp.f32 %v699_v2 }
 0x4a6   :  { %v2097_v7 = vpop.eup %1783 }
 0x4a7   :  { %v2100_v15 = vpop.eup %1785 }
 0x4a8   :  { %v1788_v20 = vpop.eup %1787 }
 0x4a9   :  { %v1790_v22 = vpop.eup %1789  ;;  %v702_v25 = vadd.f32 1.0, %v1788_v20 }
 0x4aa   :  { %v1792_v24 = vpop.eup %1791 }
 0x4ab   :  { %v1794_v28 = vpop.eup %1793 }
 0x4ff   :  { %v740_v6 = vpop.permute.xlu1 %739 }
 0x500   :  { %v736_v11 = vpop.permute.xlu0 %735  ;;  %v761_v17 = vmul.f32 %v2100_v15, %v740_v6 }
 0x501   :  { %v759_v12 = vmul.f32 %v2097_v7, %v736_v11 }
 0x503   :  { %1795 = vtanh.f32 %v759_v12  ;;  %v742_v21 = vpop.permute.xlu1 %741 }
 0x504   :  { %1797 = vrcp.f32 %v701_v9  ;;  %v738_v23 = vpop.permute.xlu0 %737  ;;  %v762_v27 = vmul.f32 %v1792_v24, %v742_v21 }
 0x505   :  { %1799 = vrcp.f32 %v700_v16  ;;  %v760_v26 = vmul.f32 %v1790_v22, %v738_v23 }
 0x506   :  { %1801 = vtanh.f32 %v761_v17 }
 0x507   :  { %1803 = vtanh.f32 %v760_v26  ;;  %v1482_v26 = vld [vmem:[%s2242_s7 + $0x7] ss:$0 sm:$0xff] }
 0x508   :  { %v744_v31 = vpop.permute.xlu0 %743  ;;  %1805 = vrcp.f32 %v702_v25 }
 0x509   :  { %v763_v32 = vmul.f32 %v1794_v28, %v744_v31  ;;  %1807 = vtanh.f32 %v762_v27 }
 0x50a   :  { %v746_v19 = vpop.permute.xlu1 %745 }
 0x50b   :  { %1809 = vtanh.f32 %v763_v32 }
 0x50c   :  { %v748_v0 = vpop.permute.xlu0 %747 }
 0x50d   :  { %v1796_v14 = vpop.eup %1795 }
 0x50e   :  { %v1798_v33 = vpop.eup %1797  ;;  %783 = vrot.lane.b32.xlu0 %v1796_v14, %s1898_s30  ;;  %v750_v36 = vpop.permute.xlu1 %749 }
 0x50f   :  { %v765_v34 = vmul.f32 %v1798_v33, %v748_v0  ;;  %v1800_v60 = vpop.eup %1799 }
 0x510   :  { %v1802_v35 = vpop.eup %1801  ;;  %v764_v29 = vmul.f32 %v1800_v60, %v746_v19 }
 0x511   :  { %1811 = vtanh.f32 %v765_v34  ;;  %v1804_v18 = vpop.eup %1803 }
 0x512   :  { %787 = vrot.lane.b32.xlu0 %v1802_v35, %s1898_s30  ;;  %1813 = vtanh.f32 %v764_v29  ;;  %785 = vrot.lane.b32.xlu1 %v1804_v18, %s1898_s30  ;;  %v1806_v30 = vpop.eup %1805 }
 0x513   :  { %v1808_v37 = vpop.eup %1807  ;;  %v766_v38 = vmul.f32 %v1806_v30, %v750_v36 }
 0x515   :  { %v1810_v39 = vpop.eup %1809  ;;  %1815 = vtanh.f32 %v766_v38 }
 0x516   :  { %791 = vrot.lane.b32.xlu0 %v1810_v39, %s1898_s30  ;;  %789 = vrot.lane.b32.xlu1 %v1808_v37, %s1898_s30 }
 0x51b   :  { %v1812_v41 = vpop.eup %1811 }
 0x51c   :  { %795 = vrot.lane.b32.xlu0 %v1812_v41, %s1898_s30  ;;  %v1814_v42 = vpop.eup %1813 }
 0x51d   :  { %793 = vrot.lane.b32.xlu1 %v1814_v42, %s1898_s30 }
 0x51f   :  { %v1816_v43 = vpop.eup %1815 }
 0x521   :  { %797 = vrot.lane.b32.xlu1 %v1816_v43, %s1898_s30 }
 0x580   :  { %v784_v45 = vpop.permute.xlu0 %783 }
 0x581   :  { %v807_v46 = vmul.f32 %v2097_v7, %v784_v45 }
 0x583   :  { %v1073_v50 = vmax.f32 %v807_v46, 0.0 }
 0x584   :  { %v788_v47 = vpop.permute.xlu0 %787  ;;  %v786_v48 = vpop.permute.xlu1 %785 }
 0x585   :  { %v808_v49 = vmul.f32 %v1790_v22, %v786_v48  ;;  %v809_v51 = vmul.f32 %v2100_v15, %v788_v47 }
 0x587   :  { %v815_v52 = vpack.c.bf16 %v808_v49, %v807_v46  ;;  %v1074_v53 = vmax.f32 %v808_v49, 0.0  ;;  %v1075_v58 = vmax.f32 %v809_v51, 0.0 }
 0x588   :  { %v790_v54 = vpop.permute.xlu1 %789  ;;  %v792_v55 = vpop.permute.xlu0 %791 }
 0x589   :  { %v810_v56 = vmul.f32 %v1792_v24, %v790_v54  ;;  %832 = vrot.lane.b32.xlu0 %v815_v52, %s1898_s30  ;;  %v2120_v57 = vpack.c.bf16 %v1074_v53, %v1073_v50  ;;  %v811_v63 = vmul.f32 %v1794_v28, %v792_v55 }
 0x58b   :  { %v816_v59 = vpack.c.bf16 %v810_v56, %v809_v51  ;;  %v1076_v61 = vmax.f32 %v810_v56, 0.0  ;;  %v1077_v5 = vmax.f32 %v811_v63, 0.0 }
 0x58d   :  { %834 = vrot.lane.b32.xlu1 %v816_v59, %s1898_s30  ;;  %v2123_v62 = vpack.c.bf16 %v1076_v61, %v1075_v58 }
 0x58e   :  { %v796_v1 = vpop.permute.xlu0 %795 }
 0x58f   :  { %v794_v2 = vpop.permute.xlu1 %793  ;;  %v813_v6 = vmul.f32 %v1798_v33, %v796_v1 }
 0x590   :  { %v812_v3 = vmul.f32 %v1800_v60, %v794_v2 }
 0x591   :  { %v1079_v16 = vmax.f32 %v813_v6, 0.0 }
 0x592   :  { %v817_v7 = vpack.c.bf16 %v812_v3, %v811_v63  ;;  %v1078_v9 = vmax.f32 %v812_v3, 0.0 }
 0x593   :  { %v798_v11 = vpop.permute.xlu1 %797 }
 0x594   :  { %v814_v12 = vmul.f32 %v1806_v30, %v798_v11  ;;  %836 = vrot.lane.b32.xlu0 %v817_v7, %s1898_s30  ;;  %v2126_v15 = vpack.c.bf16 %v1078_v9, %v1077_v5 }
 0x596   :  { %v818_v17 = vpack.c.bf16 %v814_v12, %v813_v6  ;;  %v1080_v20 = vmax.f32 %v814_v12, 0.0 }
 0x598   :  { %838 = vrot.lane.b32.xlu1 %v818_v17, %s1898_s30  ;;  %v2129_v21 = vpack.c.bf16 %v1080_v20, %v1079_v16 }
 0x5fb   :  { %v833_v22 = vpop.permute.xlu0 %832 }
 0x5fc   :  { %1658 = vmatprep.mubr.msk.bf16.mxu1 %vm294_vm3, %v833_v22 }
 0x5ff   :  { %v835_v23 = vpop.permute.xlu1 %834 }
 0x600   :  { %1659 = vmatmul.mubr.msk.bf16.vlgmr.msra.gmra.mrb[4].mxu1 %vm294_vm3, %v835_v23 }
 0x606   :  { %v837_v24 = vpop.permute.xlu0 %836 }
 0x607   :  { %1662 = vmatprep.mubr.msk.bf16.mxu1 %vm294_vm3, %v837_v24 }
 0x60a   :  { %v839_v25 = vpop.permute.xlu1 %838 }
 0x60b   :  { %1663 = vmatmul.mubr.msk.bf16.gmra.mrb[8].mxu1 %vm294_vm3, %v839_v25 }
 0x6d3   :  { %v1660_v27 = vpop.f32.mrb[4].mxu1 }
 0x6d4   :  { %v898_v28 = vpop.f32.mrb[5].mxu1  ;;  %v907_v33 = vadd.f32 %v1660_v27, %v1482_v26 }
 0x6d5   :  { %v899_v31 = vadd.f32 %v1482_v26, %v898_v28  ;;  %v1661_v32 = vpop.f32.mrb[6].mxu1 }
 0x6d6   :  { %v901_v14 = vpop.f32.mrb[7].mxu1  ;;  %v910_v34 = vadd.f32 %v1661_v32, %v1482_v26  ;;  %v1491_v47 = vmul.f32 -1.442695, %v907_v33 }
 0x6d7   :  { %1817 = vtanh.f32 %v899_v31  ;;  %v902_v0 = vadd.f32 %v1482_v26, %v901_v14  ;;  %v1489_v46 = vmul.f32 -1.442695, %v899_v31 }
 0x6d8   :  { %1819 = vtanh.f32 %v907_v33  ;;  %v1492_v49 = vmul.f32 -1.442695, %v910_v34 }
 0x6d9   :  { %1821 = vtanh.f32 %v902_v0  ;;  %v1490_v48 = vmul.f32 -1.442695, %v902_v0 }
 0x6da   :  { %1823 = vtanh.f32 %v910_v34 }
 0x6de   :  { %v1664_v60 = vpop.f32.mrb[8].mxu1 }
 0x6df   :  { %v914_v35 = vpop.f32.mrb[9].mxu1  ;;  %v923_v36 = vadd.f32 %v1664_v60, %v1482_v26 }
 0x6e0   :  { %v915_v19 = vadd.f32 %v1482_v26, %v914_v35  ;;  %v1665_v29 = vpop.f32.mrb[10].mxu1 }
 0x6e1   :  { %v1818_v18 = vpop.eup %1817  ;;  %v917_v30 = vpop.f32.mrb[11].mxu1  ;;  %v926_v42 = vadd.f32 %v1665_v29, %v1482_v26  ;;  %v1495_v52 = vmul.f32 -1.442695, %v923_v36 }
 0x6e2   :  { %1825 = vtanh.f32 %v915_v19  ;;  %993 = vrot.lane.b32.xlu0 %v1818_v18, %s1897_s29  ;;  %v1820_v37 = vpop.eup %1819  ;;  %v918_v39 = vadd.f32 %v1482_v26, %v917_v30  ;;  %v1493_v50 = vmul.f32 -1.442695, %v915_v19 }
 0x6e3   :  { %1827 = vtanh.f32 %v923_v36  ;;  %v1822_v38 = vpop.eup %1821  ;;  %v1496_v1 = vmul.f32 -1.442695, %v926_v42 }
 0x6e4   :  { %995 = vrot.lane.b32.xlu1 %v1822_v38, %s1897_s29  ;;  %v1824_v40 = vpop.eup %1823  ;;  %1829 = vtanh.f32 %v918_v39  ;;  %v1494_v58 = vmul.f32 -1.442695, %v918_v39 }
 0x6e5   :  { %1831 = vtanh.f32 %v926_v42 }
 0x6e6   :  { %997 = vrot.lane.b32.xlu0 %v1820_v37, %s1897_s29  ;;  %1833 = vpow2.f32 %v1489_v46  ;;  %v1749_v46 = vld [vmem:[%s2244_s5 + $0x10] sm:$0xff]  }
 0x6e7   :  { %1835 = vpow2.f32 %v1491_v47  ;;  %v1750_v47 = vld [vmem:[%s2244_s5 + $0x18] sm:$0xff]   ;;  %1666 = vmatprep.subr.bf16.mxu1 %v1749_v46 }
 0x6e8   :  { %999 = vrot.lane.b32.xlu1 %v1824_v40, %s1897_s29  ;;  %1837 = vpow2.f32 %v1490_v48  ;;  %1667 = vmatpush3.bf16.msra.mxu1 %v1749_v46 }
 0x6e9   :  { %1839 = vpow2.f32 %v1492_v49  ;;  %1668 = vmatprep.subr.bf16.mxu1 %v1750_v47  ;;  %v1751_v49 = vld [vmem:[%s2244_s5] sm:$0xff]  }
 0x6ea   :  { %1841 = vpow2.f32 %v1493_v50 }
 0x6eb   :  { %1843 = vpow2.f32 %v1495_v52 }
 0x6ec   :  { %v1826_v41 = vpop.eup %1825  ;;  %1669 = vmatpush3.bf16.msra.mxu1 %v1750_v47 }
 0x6ed   :  { %1001 = vrot.lane.b32.xlu0 %v1826_v41, %s1897_s29  ;;  %v1828_v43 = vpop.eup %1827  ;;  %1678 = vmatprep.subr.bf16.mxu1 %v1751_v49 }
 0x6ee   :  { %v1830_v44 = vpop.eup %1829 }
 0x6ef   :  { %1003 = vrot.lane.b32.xlu1 %v1830_v44, %s1897_s29  ;;  %v1832_v45 = vpop.eup %1831 }
 0x6f0   :  { %v1834_v51 = vpop.eup %1833 }
 0x6f1   :  { %1005 = vrot.lane.b32.xlu0 %v1828_v43, %s1897_s29  ;;  %v1836_v53 = vpop.eup %1835  ;;  %v953_v54 = vadd.f32 1.0, %v1834_v51 }
 0x6f2   :  { %v1838_v55 = vpop.eup %1837  ;;  %v955_v56 = vadd.f32 1.0, %v1836_v53 }
 0x6f3   :  { %1007 = vrot.lane.b32.xlu1 %v1832_v45, %s1897_s29  ;;  %1845 = vrcp.f32 %v953_v54  ;;  %v954_v59 = vadd.f32 1.0, %v1838_v55  ;;  %v1840_v61 = vpop.eup %1839 }
 0x6f4   :  { %1847 = vrcp.f32 %v955_v56  ;;  %v1842_v63 = vpop.eup %1841  ;;  %v956_v2 = vadd.f32 1.0, %v1840_v61 }
 0x6f5   :  { %1849 = vpow2.f32 %v1494_v58  ;;  %v957_v3 = vadd.f32 1.0, %v1842_v63  ;;  %v1844_v5 = vpop.eup %1843 }
 0x6f6   :  { %1851 = vrcp.f32 %v954_v59  ;;  %v959_v9 = vadd.f32 1.0, %v1844_v5 }
 0x6f7   :  { %1853 = vpow2.f32 %v1496_v1 }
 0x6f8   :  { %1855 = vrcp.f32 %v956_v2 }
 0x6f9   :  { %1857 = vrcp.f32 %v957_v3 }
 0x6fd   :  { %v2146_v6 = vpop.eup %1845 }
 0x6fe   :  { %v2149_v12 = vpop.eup %1847 }
 0x6ff   :  { %v1850_v16 = vpop.eup %1849 }
 0x700   :  { %v1852_v22 = vpop.eup %1851  ;;  %v958_v24 = vadd.f32 1.0, %v1850_v16 }
 0x701   :  { %v1854_v26 = vpop.eup %1853 }
 0x702   :  { %v1856_v27 = vpop.eup %1855  ;;  %v960_v32 = vadd.f32 1.0, %v1854_v26 }
 0x703   :  { %v2152_v31 = vpop.eup %1857 }
 0x754   :  { %v994_v7 = vpop.permute.xlu0 %993 }
 0x755   :  { %v1017_v11 = vmul.f32 %v2146_v6, %v994_v7 }
 0x756   :  { %v996_v23 = vpop.permute.xlu1 %995 }
 0x757   :  { %1859 = vtanh.f32 %v1017_v11  ;;  %v1018_v25 = vmul.f32 %v1852_v22, %v996_v23 }
 0x758   :  { %v998_v17 = vpop.permute.xlu0 %997  ;;  %1861 = vrcp.f32 %v959_v9 }
 0x759   :  { %v1019_v20 = vmul.f32 %v2149_v12, %v998_v17 }
 0x75a   :  { %v1000_v28 = vpop.permute.xlu1 %999 }
 0x75b   :  { %1863 = vtanh.f32 %v1019_v20  ;;  %v1020_v14 = vmul.f32 %v1856_v27, %v1000_v28 }
 0x75c   :  { %1865 = vtanh.f32 %v1018_v25 }
 0x75d   :  { %1867 = vrcp.f32 %v958_v24 }
 0x75e   :  { %1869 = vtanh.f32 %v1020_v14 }
 0x75f   :  { %v1002_v33 = vpop.permute.xlu0 %1001 }
 0x760   :  { %v1021_v0 = vmul.f32 %v2152_v31, %v1002_v33  ;;  %v1899_v33 = vmov 0  }
 0x761   :  { %v1860_v34 = vpop.eup %1859  ;;  %v1004_v36 = vpop.permute.xlu1 %1003 }
 0x762   :  { %1871 = vtanh.f32 %v1021_v0  ;;  %1041 = vrot.lane.b32.xlu0 %v1860_v34, %s1898_s30  ;;  %v1862_v60 = vpop.eup %1861  ;;  %v1307_v0 = vmax.bf16 %v1899_v33, %v1956_v4  ;;  %v1513_v4 = vld [vmem:[%s2242_s7 + $0x8] ss:$0 sm:$0xff] }
 0x763   :  { %1873 = vrcp.f32 %v960_v32  ;;  %v1006_v35 = vpop.permute.xlu0 %1005 }
 0x764   :  { %v1023_v19 = vmul.f32 %v1862_v60, %v1006_v35  ;;  %v1309_v35 = vmax.bf16 %v1899_v33, %v1974_v10 }
 0x765   :  { %v1864_v29 = vpop.eup %1863  ;;  %v1008_v41 = vpop.permute.xlu1 %1007 }
 0x766   :  { %1875 = vtanh.f32 %v1023_v19  ;;  %1045 = vrot.lane.b32.xlu0 %v1864_v29, %s1898_s30  ;;  %v1866_v18 = vpop.eup %1865  ;;  %v1310_v19 = vmax.bf16 %v1899_v33, %v1986_v13 }
 0x767   :  { %1043 = vrot.lane.b32.xlu1 %v1866_v18, %s1898_s30  ;;  %v1868_v30 = vpop.eup %1867 }
 0x768   :  { %v1022_v37 = vmul.f32 %v1868_v30, %v1004_v36  ;;  %v1870_v38 = vpop.eup %1869 }
 0x76a   :  { %1877 = vtanh.f32 %v1022_v37 }
 0x76b   :  { %1047 = vrot.lane.b32.xlu1 %v1870_v38, %s1898_s30 }
 0x76c   :  { %v1872_v39 = vpop.eup %1871 }
 0x76d   :  { %v1874_v40 = vpop.eup %1873  ;;  %1049 = vrot.lane.b32.xlu0 %v1872_v39, %s1898_s30 }
 0x76e   :  { %v1024_v42 = vmul.f32 %v1874_v40, %v1008_v41 }
 0x770   :  { %v1876_v43 = vpop.eup %1875  ;;  %1879 = vtanh.f32 %v1024_v42 }
 0x771   :  { %1053 = vrot.lane.b32.xlu0 %v1876_v43, %s1898_s30 }
 0x774   :  { %v1878_v44 = vpop.eup %1877 }
 0x775   :  { %1051 = vrot.lane.b32.xlu1 %v1878_v44, %s1898_s30 }
 0x77a   :  { %v1880_v45 = vpop.eup %1879 }
 0x77b   :  { %1055 = vrot.lane.b32.xlu1 %v1880_v45, %s1898_s30 }
 0x7d4   :  { %v1042_v48 = vpop.permute.xlu0 %1041 }
 0x7d5   :  { %v1065_v50 = vmul.f32 %v2146_v6, %v1042_v48 }
 0x7d7   :  { %v1089_v54 = vmax.f32 %v1065_v50, 0.0 }
 0x7d8   :  { %v1046_v52 = vpop.permute.xlu0 %1045 }
 0x7d9   :  { %v1044_v51 = vpop.permute.xlu1 %1043  ;;  %v1067_v56 = vmul.f32 %v2149_v12, %v1046_v52 }
 0x7da   :  { %v1066_v53 = vmul.f32 %v1852_v22, %v1044_v51 }
 0x7db   :  { %v1091_v63 = vmax.f32 %v1067_v56, 0.0 }
 0x7dc   :  { %v1090_v55 = vmax.f32 %v1066_v53, 0.0 }
 0x7dd   :  { %v1048_v58 = vpop.permute.xlu1 %1047 }
 0x7de   :  { %v1097_v59 = vpack.c.bf16 %v1090_v55, %v1089_v54  ;;  %v1068_v61 = vmul.f32 %v1856_v27, %v1048_v58  ;;  %v1752_v27 = vld [vmem:[%s2244_s5 + $0x8] sm:$0xff]  }
 0x7df   :  { %v1050_v3 = vpop.permute.xlu0 %1049 }
 0x7e0   :  { %v1092_v1 = vmax.f32 %v1068_v61, 0.0  ;;  %1109 = vrot.lane.b32.xlu0 %v1097_v59, %s1898_s30  ;;  %v1069_v5 = vmul.f32 %v2152_v31, %v1050_v3 }
 0x7e2   :  { %v1098_v2 = vpack.c.bf16 %v1092_v1, %v1091_v63  ;;  %v1093_v11 = vmax.f32 %v1069_v5, 0.0 }
 0x7e3   :  { %v1054_v7 = vpop.permute.xlu0 %1053 }
 0x7e4   :  { %1111 = vrot.lane.b32.xlu1 %v1098_v2, %s1898_s30  ;;  %v1071_v17 = vmul.f32 %v1862_v60, %v1054_v7  ;;  %v1308_v60 = vmax.bf16 %v1899_v33, %v1967_v8 }
 0x7e6   :  { %v1095_v23 = vmax.f32 %v1071_v17, 0.0 }
 0x7e7   :  { %v1052_v6 = vpop.permute.xlu1 %1051 }
 0x7e8   :  { %v1070_v9 = vmul.f32 %v1868_v30, %v1052_v6 }
 0x7ea   :  { %v1094_v16 = vmax.f32 %v1070_v9, 0.0 }
 0x7ec   :  { %v1099_v20 = vpack.c.bf16 %v1094_v16, %v1093_v11 }
 0x7ed   :  { %v1056_v12 = vpop.permute.xlu1 %1055 }
 0x7ee   :  { %v1072_v22 = vmul.f32 %v1874_v40, %v1056_v12  ;;  %1113 = vrot.lane.b32.xlu0 %v1099_v20, %s1898_s30 }
 0x7f0   :  { %v1096_v24 = vmax.f32 %v1072_v22, 0.0 }
 0x7f2   :  { %v1100_v25 = vpack.c.bf16 %v1096_v24, %v1095_v23  ;;  %1210 = vrot.lane.b32.xlu0 %v2120_v57, %s1898_s30  ;;  %v1311_v57 = vld [vmem:[%s2245_s6] sm:$0x3] }
 0x7f3   :  { %v1325_v31 = vsel %vm64_vm0, %v1311_v57, 0 }
 0x7f4   :  { %1115 = vrot.lane.b32.xlu1 %v1100_v25, %s1898_s30 }
 0x7f6   :  { %1214 = vrot.lane.b32.xlu0 %v2126_v15, %s1898_s30 }
 0x7f8   :  { %1212 = vrot.lane.b32.xlu1 %v2123_v62, %s1898_s30 }
 0x7fc   :  { %1216 = vrot.lane.b32.xlu1 %v2129_v21, %s1898_s30 }
 0x852   :  { %v1110_v26 = vpop.permute.xlu0 %1109 }
 0x853   :  { %1670 = vmatprep.mubr.msk.bf16.mxu1 %vm294_vm3, %v1110_v26 }
 0x856   :  { %v1112_v28 = vpop.permute.xlu1 %1111 }
 0x857   :  { %1671 = vmatmul.mubr.msk.bf16.vlgmr.msra.gmra.mrb[12].mxu1 %vm294_vm3, %v1112_v28 }
 0x858   :  { %1679 = vmatpush3.bf16.msra.mxu1 %v1751_v49 }
 0x859   :  { %1680 = vmatprep.subr.bf16.mxu1 %v1752_v27 }
 0x85c   :  { %1681 = vmatpush3.bf16.msra.mxu1 %v1752_v27 }
 0x85d   :  { %1733 = vmatprep.subr.msk.bf16.mxu1 %vm64_vm0, %v1311_v57 }
 0x860   :  { %v1114_v62 = vpop.permute.xlu0 %1113 }
 0x861   :  { %1674 = vmatprep.mubr.msk.bf16.mxu1 %vm294_vm3, %v1114_v62 }
 0x864   :  { %v1211_v15 = vpop.permute.xlu0 %1210 }
 0x866   :  { %v1116_v21 = vpop.permute.xlu1 %1115 }
 0x867   :  { %1675 = vmatmul.mubr.msk.bf16.gmra.mrb[16].mxu1 %vm294_vm3, %v1116_v21 }
 0x868   :  { %1682 = vmatprep.mubr.msk.bf16.mxu1 %vm294_vm3, %v1211_v15  ;;  %v1215_v14 = vpop.permute.xlu0 %1214 }
 0x86a   :  { %v1213_v32 = vpop.permute.xlu1 %1212 }
 0x86e   :  { %v1217_v34 = vpop.permute.xlu1 %1216 }
 0x86f   :  { %1683 = vmatmul.mubr.msk.bf16.vlgmr.msra.gmra.mrb[12].mxu1 %vm294_vm3, %v1213_v32 }
 0x870   :  { %1686 = vmatprep.mubr.msk.bf16.mxu1 %vm294_vm3, %v1215_v14  ;;  %1691 = vmatpush3.bf16.msra.mxu1 %v1325_v31 }
 0x877   :  { %1687 = vmatmul.mubr.msk.bf16.gmra.mrb[16].mxu1 %vm294_vm3, %v1217_v34 }
 0x878   :  { %1692 = vmatprep.mubr.msk.bf16.mxu1 %vm51_vm1, %v1307_v0 }
 0x87f   :  { %1693 = vmatmul.mubr.msk.bf16.vlgmr.msra.gmra.mrb[12].mxu1 %vm51_vm1, %v1308_v60 }
 0x880   :  { %1696 = vmatprep.mubr.msk.bf16.mxu1 %vm51_vm1, %v1309_v35 }
 0x887   :  { %1697 = vmatmul.mubr.msk.bf16.gmra.mrb[16].mxu1 %vm51_vm1, %v1310_v19 }
 0x952   :  { %v1694_v29 = vpop.f32.mrb[12].mxu1 }
 0x953   :  { %v1407_v18 = vadd.f32 %v1694_v29, %v1513_v4  ;;  %v1361_v30 = vpop.f32.mrb[13].mxu1 }
 0x954   :  { %v1405_v36 = vadd.f32 %v1513_v4, %v1361_v30  ;;  %v1695_v37 = vpop.f32.mrb[14].mxu1 }
 0x955   :  { %1881 = vtanh.f32 %v1407_v18  ;;  %v1408_v8 = vadd.f32 %v1695_v37, %v1513_v4  ;;  %v1364_v10 = vpop.f32.mrb[15].mxu1 }
 0x956   :  { %1883 = vtanh.f32 %v1405_v36  ;;  %v1406_v38 = vadd.f32 %v1513_v4, %v1364_v10 }
 0x957   :  { %1885 = vtanh.f32 %v1408_v8 }
 0x958   :  { %1887 = vtanh.f32 %v1406_v38 }
 0x95a   :  { %v1698_v39 = vpop.f32.mrb[16].mxu1 }
 0x95b   :  { %v1411_v13 = vadd.f32 %v1698_v39, %v1513_v4  ;;  %v1377_v40 = vpop.f32.mrb[17].mxu1 }
 0x95c   :  { %v1409_v41 = vadd.f32 %v1513_v4, %v1377_v40  ;;  %v1699_v42 = vpop.f32.mrb[18].mxu1 }
 0x95d   :  { %1889 = vtanh.f32 %v1411_v13  ;;  %v1412_v43 = vadd.f32 %v1699_v42, %v1513_v4  ;;  %v1380_v44 = vpop.f32.mrb[19].mxu1 }
 0x95e   :  { %1891 = vtanh.f32 %v1409_v41  ;;  %v1410_v45 = vadd.f32 %v1513_v4, %v1380_v44 }
 0x95f   :  { %v1882_v46 = vpop.eup %1881  ;;  %1893 = vtanh.f32 %v1412_v43 }
 0x960   :  { %v1884_v47 = vpop.eup %1883  ;;  %1423 = vst [vmem:[%s2246_s8 + $0x10] sm:$0xff] %v1882_v46  ;;  %1895 = vtanh.f32 %v1410_v45 }
 0x961   :  { %v1886_v48 = vpop.eup %1885  ;;  %1421 = vst [vmem:[%s2246_s8] sm:$0xff] %v1884_v47 }
 0x962   :  { %v1888_v49 = vpop.eup %1887  ;;  %1424 = vst [vmem:[%s2246_s8 + $0x18] sm:$0xff] %v1886_v48 }
 0x963   :  { %1422 = vst [vmem:[%s2246_s8 + $0x8] sm:$0xff] %v1888_v49 }
 0x967   :  { %v1890_v50 = vpop.eup %1889 }
 0x968   :  { %v1892_v51 = vpop.eup %1891  ;;  %1427 = vst [vmem:[%s2246_s8 + $0x30] sm:$0xff] %v1890_v50 }
 0x969   :  { %v1894_v52 = vpop.eup %1893  ;;  %1425 = vst [vmem:[%s2246_s8 + $0x20] sm:$0xff] %v1892_v51 }
 0x96a   :  { %v1896_v53 = vpop.eup %1895  ;;  %1428 = vst [vmem:[%s2246_s8 + $0x38] sm:$0xff] %v1894_v52 }
 0x96b   :  { %1426 = vst [vmem:[%s2246_s8 + $0x28] sm:$0xff] %v1896_v53 }

</bundles_post_ra>
